<compile_context>
chip_gen: v5e
topology: v5e:2x2
jax: 0.10.0
libtpu: 0.0.40
codegen_flags: <defaults>
</compile_context>

<pallas_src>
from functools import lru_cache, partial

import jax
import jax.numpy as jnp
from jax.experimental import pallas as pl
from jax.experimental.pallas import tpu as pltpu


# ----------------------------------------------------------------------------- kernels

def _ar_sl1_reduce_kernel(beta, has_weight, last_valid_rows, *refs):
    """Row tile: smooth-L1 * AR weight (* optional weight) -> per-tile partial sum."""
    if has_weight:
        pred_ref, target_ref, mult_ref, w_ref, psum_ref = refs
    else:
        pred_ref, target_ref, mult_ref, psum_ref = refs
        w_ref = None

    p = pred_ref[...].astype(jnp.float32)                 # bf16 inputs cast in-kernel
    t = target_ref[...].astype(jnp.float32)
    diff = jnp.abs(p - t)                                 # (tile_m, D)
    loss = jnp.where(diff < beta, (0.5 / beta) * diff * diff, diff - 0.5 * beta)
    loss = loss * mult_ref[...]        # (1, D) broadcast: column weighting (D == N)
    if w_ref is not None:
        loss = loss * w_ref[...].astype(jnp.float32)

    def _write(vals):
        # One partial sum per grid step, broadcast into an (8,128)-aligned block
        # so every step writes a distinct output block -> row axis is "parallel".
        psum_ref[...] = jnp.full(psum_ref.shape, jnp.sum(vals), dtype=psum_ref.dtype)

    if last_valid_rows is None:
        # All tiles are full: no ragged-row mask needed on any step.
        _write(loss)
    else:
        is_last = pl.program_id(0) == pl.num_programs(0) - 1

        @pl.when(is_last)
        def _():
            rows = jax.lax.broadcasted_iota(jnp.int32, loss.shape, 0)
            _write(jnp.where(rows < last_valid_rows, loss, 0.0))

        @pl.when(jnp.logical_not(is_last))
        def _():
            _write(loss)


def _ar_sl1_elem_kernel(beta, has_weight, *refs):
    """Row tile: elementwise smooth-L1 * AR weight (* optional weight)."""
    if has_weight:
        pred_ref, target_ref, mult_ref, w_ref, out_ref = refs
    else:
        pred_ref, target_ref, mult_ref, out_ref = refs
        w_ref = None

    p = pred_ref[...].astype(jnp.float32)
    t = target_ref[...].astype(jnp.float32)
    diff = jnp.abs(p - t)
    loss = jnp.where(diff < beta, (0.5 / beta) * diff * diff, diff - 0.5 * beta)
    loss = loss * mult_ref[...]
    if w_ref is not None:
        loss = loss * w_ref[...].astype(jnp.float32)
    out_ref[...] = loss.astype(out_ref.dtype)


# ----------------------------------------------------------------------------- sizing

@lru_cache(maxsize=None)
def _vmem_limit_bytes():
    """Generation-aware scoped VMEM limit: ~70% of physical, capped at 96 MiB."""
    try:
        cap = int(pltpu.get_tpu_info().vmem_capacity_bytes)
    except Exception:
        return 48 * 1024 * 1024          # safe on v5e/v6e (128 MiB) and v7x (64 MiB/TC)
    return max(32 * 1024 * 1024, min(int(cap * 0.7), 96 * 1024 * 1024))


def _compiler_params():
    return pltpu.CompilerParams(
        dimension_semantics=("parallel",),        # shard row tiles across TCs on v7x
        vmem_limit_bytes=_vmem_limit_bytes(),
    )


def _round_up(x, m):
    return ((x + m - 1) // m) * m


def _choose_tile_m(n, d, num_row_streams, vmem_limit_bytes):
    """Row-tile size: fill ~75% of the scoped VMEM limit with the double-buffered
    (tile_m, D) streams, capped at 1024 rows, multiple of 16 (bf16 packing), and
    capped so there are >= 2 grid steps (megacore balance on v7x)."""
    if n <= 16:
        return max(n, 1)                  # single full-extent block for tiny inputs
    usable = int(vmem_limit_bytes * 0.75)
    row_bytes = max(d, 1) * 4             # conservative: size as f32
    rows = usable // max(num_row_streams * 2 * row_bytes, 1)
    tile = max(16, min(1024, (rows // 16) * 16))
    half = _round_up(-(-n // 2), 16)      # round_up(cdiv(n, 2), 16)
    tile = min(tile, half)
    return min(tile, _round_up(n, 16))


def _as_kernel_dtype(x):
    """Keep f32/bf16 as-is (DMA'd natively, cast in-kernel); everything else -> f32."""
    if x.dtype in (jnp.dtype(jnp.float32), jnp.dtype(jnp.bfloat16)):
        return x
    return x.astype(jnp.float32)


# ----------------------------------------------------------------------------- wrappers

def _ar_mult_vector(pred, target):
    """O(N) prologue: per-box aspect-ratio blend weight as a (1, N) f32 row (plain XLA)."""
    pw = pred[:, 2].astype(jnp.float32)
    ph = pred[:, 3].astype(jnp.float32)
    tw = target[:, 2].astype(jnp.float32)
    th = target[:, 3].astype(jnp.float32)
    pred_ar = pw / (ph + 1e-6)
    target_ar = tw / (th + 1e-6)
    ar_diff = jnp.abs(pred_ar - target_ar)
    ar_weight = (2.0 * ar_diff + 2.0) / (ar_diff + 2.0)
    # Faithful to torch: no epsilon on min(w, h).
    ar_pre = jnp.maximum(pw, ph) / jnp.minimum(pw, ph)
    ar_tar = jnp.maximum(tw, th) / jnp.minimum(tw, th)
    ar = (ar_pre + ar_tar) / 2.0
    ar_weight2 = 2.0 * ar / (ar + 1.0)
    alpha = 0.9                           # hard-coded in the torch source (ar_weight attr unused)
    return (alpha * ar_weight + (1.0 - alpha) * ar_weight2).reshape(1, -1).astype(jnp.float32)


def _run_reduce(pred, target, mult, weight, beta):
    """Single-pass sum of the AR-weighted smooth-L1 loss (no dense HBM output)."""
    n, d = pred.shape
    num_streams = 2 + (1 if weight is not None else 0)
    tile_m = _choose_tile_m(n, d, num_streams, _vmem_limit_bytes())
    num_tiles = -(-n // tile_m)
    rem = n % tile_m
    last_valid = rem if rem else None

    row_spec = pl.BlockSpec((tile_m, d), lambda i: (i, 0))
    in_arrays = [pred, target, mult]
    in_specs = [row_spec, row_spec, pl.BlockSpec((1, d), lambda i: (0, 0))]
    if weight is not None:
        in_arrays.append(weight)
        in_specs.append(pl.BlockSpec((tile_m, weight.shape[1]), lambda i: (i, 0)))

    psums = pl.pallas_call(
        partial(_ar_sl1_reduce_kernel, float(beta), weight is not None, last_valid),
        out_shape=jax.ShapeDtypeStruct((num_tiles, 8, 128), jnp.float32),
        grid=(num_tiles,),
        in_specs=in_specs,
        out_specs=pl.BlockSpec((1, 8, 128), lambda i: (i, 0, 0)),
        compiler_params=_compiler_params(),
    )(*in_arrays)
    return jnp.sum(psums[:, 0, 0])        # tiny (num_tiles,) reduce in XLA


def _run_elementwise(pred, target, mult, weight, beta):
    """Elementwise AR-weighted smooth-L1 loss, for reduction='none'."""
    n, d = pred.shape
    num_streams = 3 + (1 if weight is not None else 0)    # inputs + output stream
    tile_m = _choose_tile_m(n, d, num_streams, _vmem_limit_bytes())
    num_tiles = -(-n // tile_m)

    row_spec = pl.BlockSpec((tile_m, d), lambda i: (i, 0))
    in_arrays = [pred, target, mult]
    in_specs = [row_spec, row_spec, pl.BlockSpec((1, d), lambda i: (0, 0))]
    if weight is not None:
        in_arrays.append(weight)
        in_specs.append(pl.BlockSpec((tile_m, weight.shape[1]), lambda i: (i, 0)))

    return pl.pallas_call(
        partial(_ar_sl1_elem_kernel, float(beta), weight is not None),
        out_shape=jax.ShapeDtypeStruct((n, d), pred.dtype),
        grid=(num_tiles,),
        in_specs=in_specs,
        out_specs=row_spec,
        compiler_params=_compiler_params(),
    )(*in_arrays)


def ar_smooth_l1_loss(pred, target, weight=None, beta=1.0, reduction="mean",
                      avg_factor=None, loss_weight=1.0):
    """Mirror of `weighted_loss(smooth_l1_loss)` forward semantics."""
    assert beta > 0
    pred = jnp.asarray(pred)
    target = jnp.asarray(target)
    if target.size == 0:
        return loss_weight * (jnp.sum(pred) * 0.0)
    assert pred.shape == target.shape
    assert pred.ndim == 2
    n, d = pred.shape
    # Faithful to the torch (N,D)*(N,) trailing-dim broadcast: requires D == N and
    # applies the per-box weight along the COLUMN axis (loss[i, j] * w[j]).
    assert n == d, "original torch broadcast (N,D)*(N,) requires D == N"

    pred = _as_kernel_dtype(pred)
    target = _as_kernel_dtype(target)
    mult = _ar_mult_vector(pred, target)      # (1, N) f32

    # Fold scalar / vector weights into the resident (1, N) row (no extra HBM
    # stream); only stream a genuinely 2-D weight as row blocks.
    w_full = None
    if weight is not None:
        w = jnp.asarray(weight)
        if w.ndim == 0:
            mult = mult * w.astype(jnp.float32)
        elif w.ndim == 1 and w.shape[0] == d:
            mult = mult * w.astype(jnp.float32).reshape(1, d)
        elif w.ndim == 2 and w.shape in ((n, d), (n, 1)):
            w_full = _as_kernel_dtype(w)
        else:
            w_full = _as_kernel_dtype(jnp.broadcast_to(w, (n, d)))

    if reduction == "none":
        # avg_factor is ignored for 'none', matching mmdet's weight_reduce_loss.
        return loss_weight * _run_elementwise(pred, target, mult, w_full, beta)
    if reduction not in ("mean", "sum"):
        raise ValueError(f"unknown reduction: {reduction}")

    total = _run_reduce(pred, target, mult, w_full, beta)
    if avg_factor is None:
        out = total / (n * d) if reduction == "mean" else total
    else:
        if reduction != "mean":
            raise ValueError('avg_factor can not be used with reduction="sum"')
        out = total / avg_factor
    return loss_weight * out


class ArSmoothL1Loss:
    """JAX/Pallas equivalent of mmrotate `arSmoothL1Loss` (no learnable params)."""

    def __init__(self, beta=1.0, reduction="mean", loss_weight=1.0):
        self.beta = beta
        self.reduction = reduction
        self.loss_weight = loss_weight
        self.ar_weight = 1.0  # present but unused, exactly like the torch module

    def __call__(self, pred, target, weight=None, avg_factor=None,
                 reduction_override=None):
        assert reduction_override in (None, "none", "mean", "sum")
        reduction = reduction_override if reduction_override else self.reduction
        return ar_smooth_l1_loss(pred, target, weight=weight, beta=self.beta,
                                 reduction=reduction, avg_factor=avg_factor,
                                 loss_weight=self.loss_weight)


# ----------------------------------------------------------------------------- reference

def _reference(pred, target, beta=1.0, weight=None, reduction="mean"):
    """Pure-jnp reference mirroring the torch forward."""
    pred = pred.astype(jnp.float32)
    target = target.astype(jnp.float32)
    diff = jnp.abs(pred - target)
    loss = jnp.where(diff < beta, 0.5 * diff * diff / beta, diff - 0.5 * beta)
    pw, ph = pred[:, 2], pred[:, 3]
    tw, th = target[:, 2], target[:, 3]
    ard = jnp.abs(pw / (ph + 1e-6) - tw / (th + 1e-6))
    arw = (2.0 * ard + 2.0) / (ard + 2.0)
    ar = (jnp.maximum(pw, ph) / jnp.minimum(pw, ph)
          + jnp.maximum(tw, th) / jnp.minimum(tw, th)) / 2.0
    arw2 = 2.0 * ar / (ar + 1.0)
    loss = loss * (0.9 * arw + 0.1 * arw2)   # same trailing-dim broadcast (D == N)
    if weight is not None:
        loss = loss * jnp.asarray(weight, jnp.float32)
    if reduction == "mean":
        return jnp.mean(loss)
    if reduction == "sum":
        return jnp.sum(loss)
    return loss


if __name__ == "__main__":
    key = jax.random.PRNGKey(0)
    k1, k2, k3, k4, k5, k6 = jax.random.split(key, 6)

    # Small square demo (D == N required by the original broadcast): 16 boxes x 16 params.
    N = D = 16
    pred = jax.random.uniform(k1, (N, D), jnp.float32, minval=0.5, maxval=2.0)
    target = jax.random.uniform(k2, (N, D), jnp.float32, minval=0.5, maxval=2.0)
    weight2d = jax.random.uniform(k3, (N, D), jnp.float32, minval=0.0, maxval=1.0)
    weight1d = jax.random.uniform(k6, (D,), jnp.float32, minval=0.0, maxval=1.0)

    loss_mod = ArSmoothL1Loss(beta=1.0, reduction="mean", loss_weight=1.0)

    # mean, unweighted (reduce-only kernel, no dense output)
    out_mean = jax.block_until_ready(loss_mod(pred, target))
    ref_mean = _reference(pred, target, beta=1.0, reduction="mean")
    assert jnp.allclose(out_mean, ref_mean, rtol=1e-5, atol=1e-6), (out_mean, ref_mean)

    # sum, with genuinely 2-D weight streamed into the kernel
    out_sum_w = jax.block_until_ready(
        loss_mod(pred, target, weight=weight2d, reduction_override="sum"))
    ref_sum_w = _reference(pred, target, beta=1.0, weight=weight2d, reduction="sum")
    assert jnp.allclose(out_sum_w, ref_sum_w, rtol=1e-5, atol=1e-5), (out_sum_w, ref_sum_w)

    # mean, with a length-N weight vector folded into the resident (1, N) row
    out_mean_v = jax.block_until_ready(
        loss_mod(pred, target, weight=weight1d, reduction_override="mean"))
    ref_mean_v = _reference(pred, target, beta=1.0, weight=weight1d, reduction="mean")
    assert jnp.allclose(out_mean_v, ref_mean_v, rtol=1e-5, atol=1e-6), (out_mean_v, ref_mean_v)

    # reduction='none' (elementwise kernel)
    out_none = jax.block_until_ready(loss_mod(pred, target, reduction_override="none"))
    ref_none = _reference(pred, target, beta=1.0, reduction="none")
    assert jnp.allclose(out_none, ref_none, rtol=1e-5, atol=1e-6)

    # Larger case exercising the multi-tile grid, megacore split and a ragged last tile.
    N2 = D2 = 360
    pred2 = jax.random.uniform(k4, (N2, D2), jnp.float32, minval=0.5, maxval=2.0)
    target2 = jax.random.uniform(k5, (N2, D2), jnp.float32, minval=0.5, maxval=2.0)
    out2 = jax.block_until_ready(loss_mod(pred2, target2))
    ref2 = _reference(pred2, target2, beta=1.0, reduction="mean")
    assert jnp.allclose(out2, ref2, rtol=1e-4, atol=1e-6), (out2, ref2)

    print("KERNEL_OK")
</pallas_src>

<mosaic_0001>
module attributes {stable_mosaic.version = 11 : i64} {
  func.func @_ar_sl1_reduce_kernel(%arg0: i32, %arg1: memref<16x16xf32, #tpu.memory_space<vmem>>, %arg2: memref<16x16xf32, #tpu.memory_space<vmem>>, %arg3: memref<1x16xf32, #tpu.memory_space<vmem>>, %arg4: memref<1x8x128xf32, #tpu.memory_space<vmem>>) attributes {dimension_semantics = [#tpu.dimension_semantics<parallel>], iteration_bounds = array<i64: 1>, scalar_prefetch = 0 : i64, scratch_operands = 0 : i64, tpu.core_type = #tpu.core_type<tc>, window_params = [{transform_indices = @transform_0, window_bounds = array<i64: 16, 16>}, {transform_indices = @transform_1, window_bounds = array<i64: 16, 16>}, {pipeline_mode = #tpu.pipeline_mode<synchronous>, transform_indices = @transform_2, window_bounds = array<i64: 1, 16>}, {transform_indices = @transform_3, window_bounds = array<i64: 1, 8, 128>}]} {
    %c0 = arith.constant 0 : index
    %c0_0 = arith.constant 0 : index
    %0 = vector.load %arg1[%c0, %c0_0] : memref<16x16xf32, #tpu.memory_space<vmem>>, vector<16x16xf32>
    %c0_1 = arith.constant 0 : index
    %c0_2 = arith.constant 0 : index
    %1 = vector.load %arg2[%c0_1, %c0_2] : memref<16x16xf32, #tpu.memory_space<vmem>>, vector<16x16xf32>
    %2 = arith.subf %0, %1 : vector<16x16xf32>
    %3 = math.absf %2 : vector<16x16xf32>
    %cst = arith.constant 1.000000e+00 : f32
    %4 = vector.broadcast %cst : f32 to vector<16x16xf32>
    %5 = arith.cmpf olt, %3, %4 : vector<16x16xf32>
    %cst_3 = arith.constant 5.000000e-01 : f32
    %6 = vector.broadcast %cst_3 : f32 to vector<16x16xf32>
    %7 = arith.mulf %6, %3 : vector<16x16xf32>
    %8 = arith.mulf %7, %3 : vector<16x16xf32>
    %cst_4 = arith.constant 5.000000e-01 : f32
    %9 = vector.broadcast %cst_4 : f32 to vector<16x16xf32>
    %10 = arith.subf %3, %9 : vector<16x16xf32>
    %11 = arith.select %5, %8, %10 : vector<16x16xi1>, vector<16x16xf32>
    %c0_5 = arith.constant 0 : index
    %c0_6 = arith.constant 0 : index
    %12 = vector.load %arg3[%c0_5, %c0_6] : memref<1x16xf32, #tpu.memory_space<vmem>>, vector<1x16xf32>
    %13 = vector.broadcast %12 : vector<1x16xf32> to vector<16x16xf32>
    %14 = arith.mulf %11, %13 : vector<16x16xf32>
    %15 = vector.shape_cast %14 : vector<16x16xf32> to vector<1x16x16xf32>
    %cst_7 = arith.constant dense<0.000000e+00> : vector<1xf32>
    %16 = vector.multi_reduction <add>, %15, %cst_7 [1, 2] : vector<1x16x16xf32> to vector<1xf32>
    %17 = vector.shape_cast %16 : vector<1xf32> to vector<1x1x1xf32>
    %18 = vector.extract %17[0, 0, 0] : f32 from vector<1x1x1xf32>
    %19 = vector.broadcast %18 : f32 to vector<1x8x128xf32>
    %c0_8 = arith.constant 0 : index
    %c0_9 = arith.constant 0 : index
    %c0_10 = arith.constant 0 : index
    %20 = vector.load %arg4[%c0_8, %c0_9, %c0_10] : memref<1x8x128xf32, #tpu.memory_space<vmem>>, vector<1x8x128xf32>
    tpu.vector_store %arg4[%c0_8, %c0_9, %c0_10], %19 {strides = array<i32>} : memref<1x8x128xf32, #tpu.memory_space<vmem>>, vector<1x8x128xf32>,
    return
  }
  func.func @transform_0(%arg0: i32) -> (i32, i32) {
    %c0_i32 = arith.constant 0 : i32
    %c0_i32_0 = arith.constant 0 : i32
    return %arg0, %c0_i32 : i32, i32
  }
  func.func @transform_1(%arg0: i32) -> (i32, i32) {
    %c0_i32 = arith.constant 0 : i32
    %c0_i32_0 = arith.constant 0 : i32
    return %arg0, %c0_i32 : i32, i32
  }
  func.func @transform_2(%arg0: i32) -> (i32, i32) {
    %c0_i32 = arith.constant 0 : i32
    %c0_i32_0 = arith.constant 0 : i32
    %c0_i32_1 = arith.constant 0 : i32
    return %c0_i32, %c0_i32_0 : i32, i32
  }
  func.func @transform_3(%arg0: i32) -> (i32, i32, i32) {
    %c0_i32 = arith.constant 0 : i32
    %c0_i32_0 = arith.constant 0 : i32
    %c0_i32_1 = arith.constant 0 : i32
    return %arg0, %c0_i32, %c0_i32_0 : i32, i32, i32
  }
}

</mosaic_0001>

<bundles_post_ra>
// kernel: tpu_custom_call.1
= control target key start
LH: loop header
LB: loop body
LE: loop exit
PB: predicated region body
PF: predicated region fallthrough
CT: control target
= control target key end

     0   :  { %8 = vsyncpa [#allocation3], 0  ;;  %s229_s0 = inlined_call_operand.hbm [shape: f32[16,16], index: 0, kind: input, shape index: {}]   ;;  %s230_s1 = inlined_call_operand.hbm [shape: f32[16,16], index: 1, kind: input, shape index: {}]   ;;  %s231_s2 = inlined_call_operand.vmem [shape: f32[1,16], index: 2, kind: input, shape index: {}]   ;;  %s232_s3 = inlined_call_operand.hbm [shape: f32[1,8,128], index: 3, kind: output, shape index: {}]  }
   0x1   :  { %9 = vsyncpa [#allocation6], 0 }
   0x2   :  { %10 = vsyncpa [#allocation4], 0  ;;  %s15_s14 = sshll.u32 %s229_s0, 4  ;;  %s192_s15 = smov [#allocation2]   ;;  %s16_s14 = int_to_ptr.hbm [resolvable:$true] %s15_s14 }
   0x3   :  { %s17_s16 = sshll.u32 %s192_s15, 4  ;;  %s28_s19 = sshll.u32 %s230_s1, 4  ;;  %s18_s16 = int_to_ptr.vmem [resolvable:$true] %s17_s16  ;;  %s29_s19 = int_to_ptr.hbm [resolvable:$true] %s28_s19 }
   0x4   :  { %s193_s20 = smov 128   ;;  %s194_s21 = smov 8  }
   0x5   :  { %23 = dma.hbm_to_vmem [thread:$0]  %s16_s14, 256, %s18_s16, [#allocation3], %s193_s20, %s193_s20, %s194_s21  }
   0x6   :  { %s195_s22 = smov [#allocation5]  }
   0x7   :  { %s30_s23 = sshll.u32 %s195_s22, 4  ;;  %s31_s23 = int_to_ptr.vmem [resolvable:$true] %s30_s23 }
   0x8   :  { %36 = dma.hbm_to_vmem [thread:$0]  %s29_s19, 256, %s31_s23, [#allocation6], %s193_s20, %s193_s20, %s194_s21  }
   0x9   :  { %186 = dma.done.wait [#allocation3], 256  }
   0xa   :  { %187 = vsyncadd [#allocation3], 4294967040 }
   0xb   :  { %188 = dma.done.wait [#allocation6], 256  }
   0xc   :  { %189 = vsyncadd [#allocation6], 4294967040  ;;  %v47_v0 = vld [vmem:[#allocation2] sm:$0xff]  ;;  %v48_v1 = vld [vmem:[#allocation2 + $0x8] sm:$0xff]  ;;  %vm71_vm2 = vcmask 130048   ;;  %s93_s27 = sshll.u32 %s232_s3, 4  ;;  %s94_s27 = int_to_ptr.hbm [resolvable:$true] %s93_s27 }
   0xd   :  { %v49_v2 = vld [vmem:[#allocation5] sm:$0xff]  ;;  %v50_v3 = vld [vmem:[#allocation5 + $0x8] sm:$0xff]  ;;  %v113_v12 = vld [vmem:[%s231_s2] ss:$0 sm:$0xff]  ;;  %s196_s2 = smov [#allocation7]  }
   0xe   :  { %v51_v4 = vsub.f32 %v47_v0, %v49_v2  ;;  %v52_v5 = vsub.f32 %v48_v1, %v50_v3  ;;  %s91_s24 = sshll.u32 %s196_s2, 4  ;;  %s92_s24 = int_to_ptr.vmem [resolvable:$true] %s91_s24 }
  0x10   :  { %v53_v6 = vand.u32 2147483647, %v51_v4  ;;  %v54_v7 = vand.u32 2147483647, %v52_v5 }
  0x12   :  { %v57_v8 = vmul.f32 0.5, %v53_v6  ;;  %v104_v9 = vadd.f32 -0.5, %v53_v6  ;;  %vm55_vm0 = vcmp.lt.f32.partialorder %v53_v6, 1.0  ;;  %v58_v10 = vmul.f32 0.5, %v54_v7 }
  0x13   :  { %v105_v11 = vadd.f32 -0.5, %v54_v7  ;;  %vm56_vm1 = vcmp.lt.f32.partialorder %v54_v7, 1.0 }
  0x14   :  { %v59_v13 = vmul.f32 %v57_v8, %v53_v6  ;;  %v60_v14 = vmul.f32 %v58_v10, %v54_v7 }
  0x16   :  { %v63_v15 = vsel %vm55_vm0, %v59_v13, %v104_v9  ;;  %v64_v16 = vsel %vm56_vm1, %v60_v14, %v105_v11 }
  0x17   :  { %v69_v17 = vmul.f32 %v113_v12, %v63_v15  ;;  %v70_v18 = vmul.f32 %v113_v12, %v64_v16 }
  0x19   :  { %v72_v19 = vsel %vm71_vm2, %v69_v17, 0.0  ;;  %v73_v20 = vsel %vm71_vm2, %v70_v18, 0.0 }
  0x1a   :  { %v74_v21 = vadd.f32 %v73_v20, %v72_v19 }
  0x1c   :  { %75 = vadd.xlane.f32.xlu0 %v74_v21 }
  0x8f   :  { %v76_v22 = vpop.xlane.xlu0 %75 }
  0x90   :  { %v77_v23 = vrot.slane %v76_v22, 4 }
  0x92   :  { %v78_v24 = vadd.f32 %v77_v23, %v76_v22 }
  0x94   :  { %v79_v25 = vrot.slane %v78_v24, 2 }
  0x96   :  { %v80_v26 = vadd.f32 %v79_v25, %v78_v24 }
  0x98   :  { %v81_v27 = vrot.slane %v80_v26, 1 }
  0x9a   :  { %v82_v28 = vadd.f32 %v81_v27, %v80_v26 }
  0x9c   :  { %106 = vpush %v82_v28 }
  0xcd   :  { %s107_s28 = spop %106 }
  0xce   :  { %v84_v29 = vstv %s107_s28 }
  0xcf   :  { %85 = vst [vmem:[#allocation7] sm:$0xff] %v84_v29 }
  0xd0   :  { %96 = dma.vmem_to_hbm [thread:$0]  %s92_s24, 128, %s94_s27, [#allocation4]  }
  0xd1   :  { %190 = dma.done.wait [#allocation4], 128  }
  0xd2   :  { %191 = vsyncadd [#allocation4], 4294967168 }
  0xd3   :  { %101 = vsyncpa [#allocation3], 1 }
  0xd4   :  { %102 = vsyncpa [#allocation6], 1 }
  0xd5   :  { %103 = vsyncpa [#allocation4], 1 }

</bundles_post_ra>
